<compile_context>
chip_gen: v7x
topology: tpu7x:2x2x1
jax: 0.10.0
libtpu: 0.0.40
codegen_flags: <defaults>
</compile_context>

<pallas_src>
import functools
import math

import numpy as np
import jax
import jax.numpy as jnp
from jax.experimental import pallas as pl
from jax.experimental.pallas import tpu as pltpu


def _round_up(x, m):
    return ((x + m - 1) // m) * m


_VMEM_LIMIT = 32 * 1024 * 1024  # conservative across v5e / v6e / v7x (64 MiB)


# ---------------------------------------------------------------------------
# Transposed tiled matmul + bias + LeakyReLU kernel (used by every conv)
#   out(O, M) = act(W(O, K) @ A(K, M) + b)   — M (spatial) is lane-dense
# ---------------------------------------------------------------------------
def _matmul_kernel(w_ref, a_ref, bias_ref, o_ref, acc_ref, *, slope):
    @pl.when(pl.program_id(2) == 0)
    def _init():
        acc_ref[...] = jnp.zeros_like(acc_ref)

    acc_ref[...] += jnp.dot(w_ref[...], a_ref[...],
                            preferred_element_type=jnp.float32)

    @pl.when(pl.program_id(2) == pl.num_programs(2) - 1)
    def _finalize():
        acc = acc_ref[...] + bias_ref[...]
        if slope is not None:
            acc = jnp.where(acc >= 0, acc, slope * acc)   # f32 epilogue (v5e-safe)
        o_ref[...] = acc.astype(o_ref.dtype)


def matmul_bias_act(w, a, bias, slope=None, out_dtype=jnp.bfloat16):
    """act(w @ a + bias). w:(O,K) bf16, a:(K,M) bf16, bias:(O,). f32 accumulate."""
    O, K = w.shape
    _, M = a.shape
    to = min(_round_up(O, 8), 128)
    Op = _round_up(O, to)
    Mp128 = _round_up(M, 128)
    tn = 128 if Mp128 <= 256 else 256        # >=2 M-tiles whenever possible (v7x)
    Mp = _round_up(M, tn)
    tk = min(512, _round_up(K, 128))
    Kp = _round_up(K, tk)

    w_p = jnp.pad(w.astype(jnp.bfloat16), ((0, Op - O), (0, Kp - K)))
    a_p = jnp.pad(a.astype(jnp.bfloat16), ((0, Kp - K), (0, Mp - M)))
    bias_p = jnp.pad(bias.reshape(O, 1).astype(jnp.float32), ((0, Op - O), (0, 0)))

    out = pl.pallas_call(
        functools.partial(_matmul_kernel, slope=slope),
        out_shape=jax.ShapeDtypeStruct((Op, Mp), out_dtype),
        grid_spec=pltpu.PrefetchScalarGridSpec(
            num_scalar_prefetch=0,
            grid=(Op // to, Mp // tn, Kp // tk),
            in_specs=[pl.BlockSpec((to, tk), lambda i, j, k: (i, k)),
                      pl.BlockSpec((tk, tn), lambda i, j, k: (k, j)),
                      pl.BlockSpec((to, 1), lambda i, j, k: (i, 0))],
            out_specs=pl.BlockSpec((to, tn), lambda i, j, k: (i, j)),
            scratch_shapes=[pltpu.VMEM((to, tn), jnp.float32)]),
        compiler_params=pltpu.CompilerParams(
            dimension_semantics=("parallel", "parallel", "arbitrary"),
            vmem_limit_bytes=_VMEM_LIMIT),
    )(w_p, a_p, bias_p)
    return out[:O, :M]


# ---------------------------------------------------------------------------
# Scalar-reduction kernels (2-D grid: (core, row-tile); per-core partials)
# ---------------------------------------------------------------------------
def _pixel_fused_kernel(a_ref, b_ref, m_ref, plain_ref, masked_ref, *, square):
    @pl.when(pl.program_id(1) == 0)
    def _():
        plain_ref[...] = jnp.zeros_like(plain_ref)
        masked_ref[...] = jnp.zeros_like(masked_ref)
    a, b, m = a_ref[...], b_ref[...], m_ref[...]
    d = a - b
    dm = m * d
    dp = d * d if square else jnp.abs(d)
    dmq = dm * dm if square else jnp.abs(dm)
    plain_ref[...] += jnp.sum(dp, keepdims=True)
    masked_ref[...] += jnp.sum(dmq, keepdims=True)


def _pixel_plain_kernel(a_ref, b_ref, o_ref, *, square):
    @pl.when(pl.program_id(1) == 0)
    def _():
        o_ref[...] = jnp.zeros_like(o_ref)
    d = a_ref[...] - b_ref[...]
    d = d * d if square else jnp.abs(d)
    o_ref[...] += jnp.sum(d, keepdims=True)


def _mse_to_one_kernel(x_ref, o_ref):
    @pl.when(pl.program_id(1) == 0)
    def _():
        o_ref[...] = jnp.zeros_like(o_ref)
    d = x_ref[...] - 1.0
    o_ref[...] += jnp.sum(d * d, keepdims=True)


def _lsgan_disc_kernel(fake_ref, real_ref, fake_out, real_out):
    @pl.when(pl.program_id(1) == 0)
    def _():
        fake_out[...] = jnp.zeros_like(fake_out)
        real_out[...] = jnp.zeros_like(real_out)
    f = fake_ref[...]
    r = real_ref[...] - 1.0
    fake_out[...] += jnp.sum(f * f, keepdims=True)
    real_out[...] += jnp.sum(r * r, keepdims=True)


def _lpips_kernel(f_ref, g_ref, o_ref):
    @pl.when(pl.program_id(1) == 0)
    def _():
        o_ref[...] = jnp.zeros_like(o_ref)
    f = f_ref[...].astype(jnp.float32)
    g = g_ref[...].astype(jnp.float32)
    fn = f * jax.lax.rsqrt(jnp.sum(f * f, axis=0, keepdims=True) + 1e-10)
    gn = g * jax.lax.rsqrt(jnp.sum(g * g, axis=0, keepdims=True) + 1e-10)
    d = fn - gn
    o_ref[...] += jnp.sum(d * d, keepdims=True)


def _flatten_lanes(x, cols=512, fill=0.0):
    """Flatten any tensor into a lane-dense (rows, cols) f32 slab (fill = neutral value)."""
    flat = x.astype(jnp.float32).reshape(-1)
    n = flat.shape[0]
    total = _round_up(n, cols)
    if total != n:
        flat = jnp.pad(flat, (0, total - n), constant_values=fill)
    return flat.reshape(total // cols, cols)


def _reduce_call(kernel, arrays, fills, n_out, row_tile=512):
    """Tiled reduction over same-shape 2-D slabs -> n_out scalars.

    Grid is (2, row_tiles): leading axis is 'parallel' so both v7x TensorCores
    get half the rows; per-core partial sums live in (8,128) resident blocks
    and are summed in the wrapper.
    """
    R, Cw = arrays[0].shape
    tr = min(row_tile, _round_up(R, 8))
    Rp = _round_up(R, 2 * tr)
    half = Rp // (2 * tr)
    padded = [a if Rp == R else jnp.pad(a, ((0, Rp - R), (0, 0)), constant_values=f)
              for a, f in zip(arrays, fills)]
    imap = lambda c, i: (c * half + i, 0)
    in_specs = [pl.BlockSpec((tr, Cw), imap) for _ in padded]
    out_specs = [pl.BlockSpec((8, 128), lambda c, i: (c, 0)) for _ in range(n_out)]
    out_shape = [jax.ShapeDtypeStruct((16, 128), jnp.float32) for _ in range(n_out)]
    outs = pl.pallas_call(
        kernel,
        out_shape=out_shape if n_out > 1 else out_shape[0],
        grid_spec=pltpu.PrefetchScalarGridSpec(
            num_scalar_prefetch=0,
            grid=(2, half),
            in_specs=in_specs,
            out_specs=out_specs if n_out > 1 else out_specs[0]),
        compiler_params=pltpu.CompilerParams(
            dimension_semantics=("parallel", "arbitrary"),
            vmem_limit_bytes=_VMEM_LIMIT),
    )(*padded)
    if n_out == 1:
        return outs[0, 0] + outs[8, 0]
    return [o[0, 0] + o[8, 0] for o in outs]


def _lpips_reduce(fr, fi):
    """Sum over pixels of channel-normalized squared feature distance.

    fr/fi: (C, Npix) lane-dense feature slabs (bf16 or f32)."""
    Cc, M = fr.shape
    tc = min(512, _round_up(M, 128))
    Mp = _round_up(M, 2 * tc)
    half = Mp // (2 * tc)
    if Mp != M:
        fr = jnp.pad(fr, ((0, 0), (0, Mp - M)))
        fi = jnp.pad(fi, ((0, 0), (0, Mp - M)))
    imap = lambda c, i: (0, c * half + i)
    out = pl.pallas_call(
        _lpips_kernel,
        out_shape=jax.ShapeDtypeStruct((16, 128), jnp.float32),
        grid_spec=pltpu.PrefetchScalarGridSpec(
            num_scalar_prefetch=0,
            grid=(2, half),
            in_specs=[pl.BlockSpec((Cc, tc), imap),
                      pl.BlockSpec((Cc, tc), imap)],
            out_specs=pl.BlockSpec((8, 128), lambda c, i: (c, 0))),
        compiler_params=pltpu.CompilerParams(
            dimension_semantics=("parallel", "arbitrary"),
            vmem_limit_bytes=_VMEM_LIMIT),
    )(fr, fi)
    return out[0, 0] + out[8, 0]


# ---------------------------------------------------------------------------
# Fused spectral loss: batched per-step 2-D DFT (as matmuls) + amplitude + MSE
# Layout: images laid side-by-side along lanes as (H, B*W); column DFT via a
# block-diagonal (128//W images per step) matrix so every matmul is lane-dense.
# ---------------------------------------------------------------------------
def _spectral_kernel(xin_ref, xrec_ref, ch_ref, sh_ref, cwb_ref, swb_ref, o_ref):
    @pl.when(pl.program_id(1) == 0)
    def _():
        o_ref[...] = jnp.zeros_like(o_ref)

    ch, sh = ch_ref[...], sh_ref[...]
    cwb, swb = cwb_ref[...], swb_ref[...]

    def amplitude(x):
        ar = jnp.dot(ch, x, preferred_element_type=jnp.float32)    # row DFT (real)
        ai = -jnp.dot(sh, x, preferred_element_type=jnp.float32)   # row DFT (imag)
        fr = (jnp.dot(ar, cwb, preferred_element_type=jnp.float32)
              + jnp.dot(ai, swb, preferred_element_type=jnp.float32))
        fi = (jnp.dot(ai, cwb, preferred_element_type=jnp.float32)
              - jnp.dot(ar, swb, preferred_element_type=jnp.float32))
        # TODO(synk): add eps inside sqrt if this loss is ever differentiated.
        return jnp.sqrt(fr * fr + fi * fi)

    d = amplitude(xin_ref[...]) - amplitude(xrec_ref[...])
    o_ref[...] += jnp.sum(d * d, keepdims=True)


@functools.lru_cache(maxsize=8)
def _dft_mats_np(n):
    idx = np.arange(n, dtype=np.float64)
    ang = 2.0 * np.pi * np.outer(idx, idx) / n
    s = 1.0 / np.sqrt(float(n))                   # "ortho" normalization
    return (np.cos(ang) * s).astype(np.float32), (np.sin(ang) * s).astype(np.float32)


@functools.lru_cache(maxsize=8)
def _dft_row_mats(h):
    c, s = _dft_mats_np(h)
    return jnp.asarray(c), jnp.asarray(s)


@functools.lru_cache(maxsize=8)
def _dft_col_blockdiag(w, bt):
    c, s = _dft_mats_np(w)
    cb = np.zeros((bt * w, bt * w), np.float32)
    sb = np.zeros((bt * w, bt * w), np.float32)
    for b in range(bt):
        cb[b * w:(b + 1) * w, b * w:(b + 1) * w] = c
        sb[b * w:(b + 1) * w, b * w:(b + 1) * w] = s
    return jnp.asarray(cb), jnp.asarray(sb)


def spectral_loss(inp, rec):
    N, C, H, W = inp.shape
    L = W * (128 // math.gcd(W, 128))             # lane block = whole images, 128-aligned
    bt = L // W                                   # images per grid step
    ch, sh = _dft_row_mats(H)
    cwb, swb = _dft_col_blockdiag(W, bt)

    def to_cols(x):                               # (N,C,H,W) -> (H, N*C*W)
        return x.astype(jnp.float32).transpose(2, 0, 1, 3).reshape(H, N * C * W)

    xi, xr = to_cols(inp), to_cols(rec)
    Tc = N * C * W
    Tp = _round_up(Tc, 2 * L)                     # 2-way split for v7x dual core
    if Tp != Tc:                                  # zero columns -> zero amplitude diff
        xi = jnp.pad(xi, ((0, 0), (0, Tp - Tc)))
        xr = jnp.pad(xr, ((0, 0), (0, Tp - Tc)))
    half = Tp // (2 * L)
    imap = lambda c, i: (0, c * half + i)

    out = pl.pallas_call(
        _spectral_kernel,
        out_shape=jax.ShapeDtypeStruct((16, 128), jnp.float32),
        grid_spec=pltpu.PrefetchScalarGridSpec(
            num_scalar_prefetch=0,
            grid=(2, half),
            in_specs=[pl.BlockSpec((H, L), imap),
                      pl.BlockSpec((H, L), imap),
                      pl.BlockSpec((H, H), lambda c, i: (0, 0)),
                      pl.BlockSpec((H, H), lambda c, i: (0, 0)),
                      pl.BlockSpec((L, L), lambda c, i: (0, 0)),
                      pl.BlockSpec((L, L), lambda c, i: (0, 0))],
            out_specs=pl.BlockSpec((8, 128), lambda c, i: (c, 0))),
        compiler_params=pltpu.CompilerParams(
            dimension_semantics=("parallel", "arbitrary"),
            vmem_limit_bytes=_VMEM_LIMIT),
    )(xi, xr, ch, sh, cwb, swb)
    return (out[0, 0] + out[8, 0]) / (N * C * H * W)


# ---------------------------------------------------------------------------
# Conv2d in (C, N, H, W) layout -> transposed matmul, lane-dense spatial dim
# ---------------------------------------------------------------------------
# TODO(synk): the k*k window extraction below still materializes a k^2-expanded
# bf16 tensor in HBM; folding it into the matmul grid (windowed async copies
# from the padded activation) is the remaining bandwidth optimization.
def conv2d_cnhw(x, wm, b, *, k, stride, pad, slope, out_dtype=jnp.bfloat16):
    """x: (C,N,H,W) bf16, wm: (O, k*k*C) bf16 (row order = (di,dj,c)), b: (O,)."""
    C, N, H, W = x.shape
    O = wm.shape[0]
    Ho = (H + 2 * pad - k) // stride + 1
    Wo = (W + 2 * pad - k) // stride + 1
    xp = jnp.pad(x, ((0, 0), (0, 0), (pad, pad), (pad, pad)))
    cols = [xp[:, :, di:di + stride * Ho:stride, dj:dj + stride * Wo:stride]
            for di in range(k) for dj in range(k)]
    a = jnp.concatenate(cols, axis=0).reshape(k * k * C, N * Ho * Wo)
    y = matmul_bias_act(wm, a, b, slope=slope, out_dtype=out_dtype)
    return y.reshape(O, N, Ho, Wo)


# ---------------------------------------------------------------------------
# Sub-module parameters (deterministic synthetic weights, bf16 pre-cast)
# ---------------------------------------------------------------------------
def _conv_weight_matrix(w):
    """(O,C,k,k) -> (O, k*k*C) with column order (di, dj, c); bf16 for the MXU."""
    O, C, k, _ = w.shape
    return w.transpose(0, 2, 3, 1).reshape(O, k * k * C).astype(jnp.bfloat16)


def init_discriminator_params(key, in_channels, channels=(8, 16), k=4):
    # TODO(synk): MONAI PatchDiscriminator's norm layers omitted; conv+LeakyReLU stack only.
    layers = []
    c_in = in_channels
    keys = jax.random.split(key, len(channels) + 1)
    for i, c_out in enumerate(channels):
        w = 0.05 * jax.random.normal(keys[i], (c_out, c_in, k, k), jnp.float32)
        layers.append(dict(wm=_conv_weight_matrix(w), b=jnp.zeros((c_out,), jnp.float32),
                           k=k, stride=2, pad=1, slope=0.2))
        c_in = c_out
    w = 0.05 * jax.random.normal(keys[-1], (1, c_in, k, k), jnp.float32)
    layers.append(dict(wm=_conv_weight_matrix(w), b=jnp.zeros((1,), jnp.float32),
                       k=k, stride=1, pad=1, slope=None))
    return layers


def init_perceptual_params(key, in_channels):
    # TODO(synk): pretrained LPIPS backbone cannot be loaded here; deterministic random
    # 2-layer conv feature extractor stands in (same normalized-feature-distance structure).
    k1, k2 = jax.random.split(key)
    w1 = 0.1 * jax.random.normal(k1, (8, in_channels, 3, 3), jnp.float32)
    w2 = 0.1 * jax.random.normal(k2, (16, 8, 3, 3), jnp.float32)
    return [dict(wm=_conv_weight_matrix(w1), b=jnp.zeros((8,), jnp.float32),
                 k=3, stride=1, pad=1, slope=0.0),
            dict(wm=_conv_weight_matrix(w2), b=jnp.zeros((16,), jnp.float32),
                 k=3, stride=2, pad=1, slope=0.0)]


def discriminator_forward(layers, x_cnhw):
    feats = [x_cnhw]
    h = x_cnhw
    for i, layer in enumerate(layers):
        # final (O=1) logits in f32 for loss precision; everything else bf16
        # TODO(synk): fuse the last-layer LSGAN loss into the matmul epilogue.
        out_dtype = jnp.float32 if i == len(layers) - 1 else jnp.bfloat16
        h = conv2d_cnhw(h, layer['wm'], layer['b'], k=layer['k'], stride=layer['stride'],
                        pad=layer['pad'], slope=layer['slope'], out_dtype=out_dtype)
        feats.append(h)
    return feats  # feats[-1] are the patch logits, shape (1, N, Ho, Wo)


def perceptual_loss(layers, rec_cnhw, inp_cnhw):
    """LPIPS-style loss; rec+inp batched through the extractor in one pass."""
    N = rec_cnhw.shape[1]
    h = jnp.concatenate([rec_cnhw, inp_cnhw], axis=1)
    total = jnp.float32(0.0)
    for layer in layers:
        h = conv2d_cnhw(h, layer['wm'], layer['b'], k=layer['k'], stride=layer['stride'],
                        pad=layer['pad'], slope=layer['slope'])
        Cc, Nb, Hh, Wh = h.shape
        f = h.reshape(Cc, Nb * Hh * Wh)           # lane-dense (C, Npix) features
        M0 = N * Hh * Wh
        total = total + _lpips_reduce(f[:, :M0], f[:, M0:]) / (N * Hh * Wh)
    return total


# ---------------------------------------------------------------------------
# VQGANLoss
# ---------------------------------------------------------------------------
class VQGANLossPallas:
    def __init__(self, *, spatial_dims=2, pixel_loss='l1', adverserial_weight=1.0,
                 perceptual_weight=1.0, spectral_weight=1.0, vessel_weight=0.0,
                 quantization_weight=1.0, discriminator_step_start=10000,
                 wasserstein_loss=False, in_channels=4, key=None):
        if spatial_dims != 2:
            raise ValueError("only spatial_dims=2 implemented")  # TODO(synk): 3D variant
        if pixel_loss not in ('l1', 'l2'):
            raise ValueError('Unknown per-pixel loss function. Must be one of ["l1", "l2"]')
        self.pixel_loss_kind = pixel_loss
        self.perceptual_weight = perceptual_weight
        self.adverserial_weight = adverserial_weight
        self.spectral_weight = spectral_weight
        self.vessel_weight = vessel_weight
        self.quantization_weight = quantization_weight
        self.discriminator_step_start = discriminator_step_start
        self.wasserstein_loss = wasserstein_loss
        kd, kp = jax.random.split(key)
        self.disc_params = init_discriminator_params(kd, in_channels)
        self.perc_params = init_perceptual_params(kp, in_channels)

    # -- adaptive weight ---------------------------------------------------
    def adaptive_weight(self):
        # TODO(synk): autograd-based Wasserstein lambda (torch.autograd.grad through the
        # decoder's last layer) has no equivalent here; non-Wasserstein path returns 1.0.
        return jnp.float32(1.0)

    # -- forward -----------------------------------------------------------
    def forward(self, input, reconstruction, quantization_loss,
                decoder_last_layer_weight, vessel_mask, global_step,
                optimize_over, split):
        # TODO(synk): global_step must be a static Python int (warm-up gates use
        # Python `if`); pass lax.cond-based gating if it ever becomes traced.
        sq = self.pixel_loss_kind == 'l2'
        inp_f = input.astype(jnp.float32)
        rec_f = reconstruction.astype(jnp.float32)
        N = inp_f.shape[0]

        if optimize_over == 'generator':
            # ---- pixel (+ fused vessel-masked) loss ------------------------
            # NOTE: vessel-masked loss is normalized by the total element count
            # (matches nn.L1Loss/MSELoss applied to mask*rec vs mask*inp).
            a2, b2 = _flatten_lanes(rec_f), _flatten_lanes(inp_f)
            loss_vessels = jnp.float32(0.0)
            if vessel_mask is not None and self.vessel_weight > 0:
                m = jnp.broadcast_to(vessel_mask, rec_f.shape).astype(jnp.float32)
                s_plain, s_mask = _reduce_call(
                    functools.partial(_pixel_fused_kernel, square=sq),
                    [a2, b2, _flatten_lanes(m)], [0.0, 0.0, 0.0], 2)
                loss_vessels = self.vessel_weight * (s_mask / rec_f.size)
                loss_reconstruct = s_plain / rec_f.size + loss_vessels
            else:
                s_plain = _reduce_call(
                    functools.partial(_pixel_plain_kernel, square=sq),
                    [a2, b2], [0.0, 0.0], 1)
                loss_reconstruct = s_plain / rec_f.size

            # ---- perceptual ((C,N,H,W) bf16 layout, rec+inp batched) -------
            rec_cnhw = rec_f.transpose(1, 0, 2, 3).astype(jnp.bfloat16)
            inp_cnhw = inp_f.transpose(1, 0, 2, 3).astype(jnp.bfloat16)
            loss_perceptual = perceptual_loss(self.perc_params, rec_cnhw, inp_cnhw)
            loss_reconstruct = loss_reconstruct + self.perceptual_weight * loss_perceptual

            # ---- adversarial (gated: skip the disc pass during warm-up) ----
            if global_step >= self.discriminator_step_start:
                logits_fake = discriminator_forward(self.disc_params, rec_cnhw)[-1]
                if self.wasserstein_loss:
                    loss_gan = -jnp.mean(logits_fake.astype(jnp.float32))
                else:
                    lf = _flatten_lanes(logits_fake, fill=1.0)
                    loss_gan = _reduce_call(_mse_to_one_kernel, [lf], [1.0], 1) / logits_fake.size
            else:
                loss_gan = jnp.float32(0.0)

            loss_generator = loss_reconstruct + self.quantization_weight * quantization_loss

            lamb = jnp.float32(0.0)
            if global_step >= self.discriminator_step_start and split == 'train':
                lamb = self.adaptive_weight()
                loss_generator = loss_generator + lamb * self.adverserial_weight * loss_gan

            if self.spectral_weight > 0:
                loss_spectral = self.spectral_weight * spectral_loss(inp_f, rec_f)
            else:
                loss_spectral = jnp.float32(0.0)
            loss_generator = loss_generator + loss_spectral

            logs = {
                f'{split}/loss_reconstruction': loss_reconstruct,
                f'{split}/loss_vessels': loss_vessels,
                f'{split}/loss_perceptual': loss_perceptual,
                f'{split}/loss_spectral': loss_spectral,
                f'{split}/loss_quantization': quantization_loss,
                f'{split}/loss_generator': loss_generator,
                f'{split}/loss_adverserial': loss_gan,
                f'{split}/lambda': lamb,
            }
            return loss_generator, logs
        else:
            # ---- discriminator branch -------------------------------------
            # Fully skip the discriminator during warm-up (reference multiplies
            # the loss by zero anyway).
            if global_step < self.discriminator_step_start:
                loss_discriminator = jnp.float32(0.0)
                return loss_discriminator, {f'{split}/loss_discriminator': loss_discriminator}

            rec_cnhw = rec_f.transpose(1, 0, 2, 3).astype(jnp.bfloat16)
            inp_cnhw = inp_f.transpose(1, 0, 2, 3).astype(jnp.bfloat16)
            logits = discriminator_forward(
                self.disc_params, jnp.concatenate([rec_cnhw, inp_cnhw], axis=1))[-1]
            logits_fake, logits_real = logits[:, :N], logits[:, N:]

            if self.wasserstein_loss:
                loss_discriminator = (jnp.mean(jax.nn.softplus(-logits_real.astype(jnp.float32))) +
                                      jnp.mean(jax.nn.softplus(logits_fake.astype(jnp.float32))))
            else:
                lf = _flatten_lanes(logits_fake, fill=0.0)
                lr = _flatten_lanes(logits_real, fill=1.0)
                s_fake, s_real = _reduce_call(_lsgan_disc_kernel, [lf, lr], [0.0, 1.0], 2)
                loss_discriminator = s_fake / logits_fake.size + s_real / logits_real.size

            loss_discriminator = loss_discriminator * 0.5 * self.adverserial_weight
            return loss_discriminator, {f'{split}/loss_discriminator': loss_discriminator}


# ---------------------------------------------------------------------------
if __name__ == "__main__":
    key = jax.random.PRNGKey(0)
    k_in, k_rec, k_mask, k_params = jax.random.split(key, 4)

    N, C, H, W = 2, 4, 16, 16
    inp = jax.random.normal(k_in, (N, C, H, W), jnp.float32)
    rec = inp + 0.1 * jax.random.normal(k_rec, (N, C, H, W), jnp.float32)
    vessel_mask = (jax.random.uniform(k_mask, (N, 1, H, W)) > 0.5).astype(jnp.float32)
    quantization_loss = jnp.float32(0.05)
    decoder_last_layer_weight = jnp.zeros((C, C, 3, 3), jnp.float32)  # only used for Wasserstein λ

    loss_mod = VQGANLossPallas(
        spatial_dims=2, pixel_loss='l1', adverserial_weight=1.0,
        perceptual_weight=1.0, spectral_weight=1.0, vessel_weight=0.5,
        quantization_weight=1.0, discriminator_step_start=0,
        wasserstein_loss=False, in_channels=C, key=k_params)

    gen_loss, gen_logs = loss_mod.forward(
        inp, rec, quantization_loss, decoder_last_layer_weight, vessel_mask,
        global_step=1, optimize_over='generator', split='train')
    disc_loss, disc_logs = loss_mod.forward(
        inp, rec, quantization_loss, decoder_last_layer_weight, vessel_mask,
        global_step=1, optimize_over='discriminator', split='train')

    jax.block_until_ready((gen_loss, disc_loss, gen_logs, disc_logs))
    print("KERNEL_OK")
</pallas_src>

<mosaic_0001>
module attributes {stable_mosaic.version = 11 : i64} {
  func.func @_pixel_fused_kernel(%arg0: i32, %arg1: i32, %arg2: memref<8x512xf32, #tpu.memory_space<vmem>>, %arg3: memref<8x512xf32, #tpu.memory_space<vmem>>, %arg4: memref<8x512xf32, #tpu.memory_space<vmem>>, %arg5: memref<8x128xf32, #tpu.memory_space<vmem>>, %arg6: memref<8x128xf32, #tpu.memory_space<vmem>>) attributes {dimension_semantics = [#tpu.dimension_semantics<parallel>, #tpu.dimension_semantics<arbitrary>], iteration_bounds = array<i64: 2, 1>, scalar_prefetch = 0 : i64, scratch_operands = 0 : i64, tpu.core_type = #tpu.core_type<tc>, window_params = [{transform_indices = @transform_0, window_bounds = array<i64: 8, 512>}, {transform_indices = @transform_1, window_bounds = array<i64: 8, 512>}, {transform_indices = @transform_2, window_bounds = array<i64: 8, 512>}, {transform_indices = @transform_3, window_bounds = array<i64: 8, 128>}, {transform_indices = @transform_4, window_bounds = array<i64: 8, 128>}]} {
    %c0_i32 = arith.constant 0 : i32
    %0 = arith.cmpi eq, %arg1, %c0_i32 : i32
    %1 = arith.extui %0 : i1 to i32
    %c0_i32_0 = arith.constant 0 : i32
    %2 = arith.cmpi ne, %1, %c0_i32_0 : i32
    scf.if %2 {
      %cst_15 = arith.constant 0.000000e+00 : f32
      %28 = vector.broadcast %cst_15 : f32 to vector<8x128xf32>
      %c0_16 = arith.constant 0 : index
      %c0_17 = arith.constant 0 : index
      %29 = vector.load %arg5[%c0_16, %c0_17] : memref<8x128xf32, #tpu.memory_space<vmem>>, vector<8x128xf32>
      tpu.vector_store %arg5[%c0_16, %c0_17], %28 {strides = array<i32>} : memref<8x128xf32, #tpu.memory_space<vmem>>, vector<8x128xf32>,
      %cst_18 = arith.constant 0.000000e+00 : f32
      %30 = vector.broadcast %cst_18 : f32 to vector<8x128xf32>
      %c0_19 = arith.constant 0 : index
      %c0_20 = arith.constant 0 : index
      %31 = vector.load %arg6[%c0_19, %c0_20] : memref<8x128xf32, #tpu.memory_space<vmem>>, vector<8x128xf32>
      tpu.vector_store %arg6[%c0_19, %c0_20], %30 {strides = array<i32>} : memref<8x128xf32, #tpu.memory_space<vmem>>, vector<8x128xf32>,
    } else {
    }
    %c0 = arith.constant 0 : index
    %c0_1 = arith.constant 0 : index
    %3 = vector.load %arg2[%c0, %c0_1] : memref<8x512xf32, #tpu.memory_space<vmem>>, vector<8x512xf32>
    %c0_2 = arith.constant 0 : index
    %c0_3 = arith.constant 0 : index
    %4 = vector.load %arg3[%c0_2, %c0_3] : memref<8x512xf32, #tpu.memory_space<vmem>>, vector<8x512xf32>
    %c0_4 = arith.constant 0 : index
    %c0_5 = arith.constant 0 : index
    %5 = vector.load %arg4[%c0_4, %c0_5] : memref<8x512xf32, #tpu.memory_space<vmem>>, vector<8x512xf32>
    %6 = arith.subf %3, %4 : vector<8x512xf32>
    %7 = arith.mulf %5, %6 : vector<8x512xf32>
    %8 = math.absf %6 : vector<8x512xf32>
    %9 = math.absf %7 : vector<8x512xf32>
    %c0_6 = arith.constant 0 : index
    %c0_7 = arith.constant 0 : index
    %10 = vector.load %arg5[%c0_6, %c0_7] : memref<8x128xf32, #tpu.memory_space<vmem>>, vector<8x128xf32>
    %11 = vector.shape_cast %8 : vector<8x512xf32> to vector<1x8x512xf32>
    %cst = arith.constant dense<0.000000e+00> : vector<1xf32>
    %12 = vector.multi_reduction <add>, %11, %cst [1, 2] : vector<1x8x512xf32> to vector<1xf32>
    %13 = vector.shape_cast %12 : vector<1xf32> to vector<1x1x1xf32>
    %14 = vector.extract %13[0, 0, 0] : f32 from vector<1x1x1xf32>
    %15 = vector.broadcast %14 : f32 to vector<1x1xf32>
    %16 = vector.broadcast %15 : vector<1x1xf32> to vector<8x128xf32>
    %17 = arith.addf %10, %16 : vector<8x128xf32>
    %c0_8 = arith.constant 0 : index
    %c0_9 = arith.constant 0 : index
    %18 = vector.load %arg5[%c0_8, %c0_9] : memref<8x128xf32, #tpu.memory_space<vmem>>, vector<8x128xf32>
    tpu.vector_store %arg5[%c0_8, %c0_9], %17 {strides = array<i32>} : memref<8x128xf32, #tpu.memory_space<vmem>>, vector<8x128xf32>,
    %c0_10 = arith.constant 0 : index
    %c0_11 = arith.constant 0 : index
    %19 = vector.load %arg6[%c0_10, %c0_11] : memref<8x128xf32, #tpu.memory_space<vmem>>, vector<8x128xf32>
    %20 = vector.shape_cast %9 : vector<8x512xf32> to vector<1x8x512xf32>
    %cst_12 = arith.constant dense<0.000000e+00> : vector<1xf32>
    %21 = vector.multi_reduction <add>, %20, %cst_12 [1, 2] : vector<1x8x512xf32> to vector<1xf32>
    %22 = vector.shape_cast %21 : vector<1xf32> to vector<1x1x1xf32>
    %23 = vector.extract %22[0, 0, 0] : f32 from vector<1x1x1xf32>
    %24 = vector.broadcast %23 : f32 to vector<1x1xf32>
    %25 = vector.broadcast %24 : vector<1x1xf32> to vector<8x128xf32>
    %26 = arith.addf %19, %25 : vector<8x128xf32>
    %c0_13 = arith.constant 0 : index
    %c0_14 = arith.constant 0 : index
    %27 = vector.load %arg6[%c0_13, %c0_14] : memref<8x128xf32, #tpu.memory_space<vmem>>, vector<8x128xf32>
    tpu.vector_store %arg6[%c0_13, %c0_14], %26 {strides = array<i32>} : memref<8x128xf32, #tpu.memory_space<vmem>>, vector<8x128xf32>,
    return
  }
  func.func @transform_0(%arg0: i32, %arg1: i32) -> (i32, i32) {
    %c1_i32 = arith.constant 1 : i32
    %0 = arith.muli %arg0, %c1_i32 : i32
    %1 = arith.addi %0, %arg1 : i32
    %c0_i32 = arith.constant 0 : i32
    %c0_i32_0 = arith.constant 0 : i32
    return %1, %c0_i32 : i32, i32
  }
  func.func @transform_1(%arg0: i32, %arg1: i32) -> (i32, i32) {
    %c1_i32 = arith.constant 1 : i32
    %0 = arith.muli %arg0, %c1_i32 : i32
    %1 = arith.addi %0, %arg1 : i32
    %c0_i32 = arith.constant 0 : i32
    %c0_i32_0 = arith.constant 0 : i32
    return %1, %c0_i32 : i32, i32
  }
  func.func @transform_2(%arg0: i32, %arg1: i32) -> (i32, i32) {
    %c1_i32 = arith.constant 1 : i32
    %0 = arith.muli %arg0, %c1_i32 : i32
    %1 = arith.addi %0, %arg1 : i32
    %c0_i32 = arith.constant 0 : i32
    %c0_i32_0 = arith.constant 0 : i32
    return %1, %c0_i32 : i32, i32
  }
  func.func @transform_3(%arg0: i32, %arg1: i32) -> (i32, i32) {
    %c0_i32 = arith.constant 0 : i32
    %c0_i32_0 = arith.constant 0 : i32
    return %arg0, %c0_i32 : i32, i32
  }
  func.func @transform_4(%arg0: i32, %arg1: i32) -> (i32, i32) {
    %c0_i32 = arith.constant 0 : i32
    %c0_i32_0 = arith.constant 0 : i32
    return %arg0, %c0_i32 : i32, i32
  }
}

</mosaic_0001>

<bundles_post_ra>
// kernel: tpu_custom_call.1
= control target key start
LH: loop header
LB: loop body
LE: loop exit
PB: predicated region body
PF: predicated region fallthrough
CT: control target
= control target key end

     0   :  { %s1227_s0 = inlined_call_operand.hbm [shape: f32[16,512], index: 0, kind: input, shape index: {}]   ;;  %s1228_s1 = inlined_call_operand.hbm [shape: f32[16,512], index: 1, kind: input, shape index: {}]   ;;  %s1229_s2 = inlined_call_operand.hbm [shape: f32[16,512], index: 2, kind: input, shape index: {}]   ;;  %s1230_s3 = inlined_call_operand.hbm [shape: f32[16,128], index: 3, kind: output, shape index: {0}]   ;;  %s1231_s4 = inlined_call_operand.hbm [shape: f32[16,128], index: 4, kind: output, shape index: {1}]  }
   0x1   :  { %1240 = sst [smem:[#allocation19_spill]] %s1228_s1 }
   0x2   :  { %10 = vsyncpa [#allocation3], 0 }
   0x3   :  { %12 = vsyncpa [#allocation3 + $0x1], 0 }
   0x4   :  { %13 = vsyncpa [#allocation6], 0 }
   0x5   :  { %15 = vsyncpa [#allocation6 + $0x1], 0 }
   0x6   :  { %16 = vsyncpa [#allocation4], 0 }
   0x7   :  { %18 = vsyncpa [#allocation4 + $0x1], 0 }
   0x8   :  { %19 = vsyncpa [#allocation10], 0 }
   0x9   :  { %21 = vsyncpa [#allocation10 + $0x1], 0  ;;  %s926_s15 = smov 0   ;;  %s928_s16 = smov 0  }
   0xa   :  { %s930_s17 = smov 0   ;;  %s932_s18 = smov 0  }
   0xb   :  { %s934_s19 = smov 0   ;;  %s936_s20 = smov 0  }
   0xc LB: > { %1241 = sst [smem:[#allocation15_spill]] %s890_s19  ;;  %s957_s21 = sadd.s32 4294967295, %s894_s20   ;;  %s894_s20 = sphi %s936_s20, %s27_s20   ;;  %s890_s19 = sphi %s934_s19, %s1265_s19   ;;  %s886_s18 = sphi %s932_s18, %s1264_s18   ;;  %s882_s17 = sphi %s930_s17, %s1268_s17   ;;  %s878_s16 = sphi %s928_s16, %s1267_s16   ;;  %s874_s15 = sphi %s926_s15, %s1266_s15  }
   0xd   : > { %1242 = sst [smem:[#allocation16_spill]] %s894_s20  ;;  %s577_s22 = sadd.s32 4294967294, %s894_s20  }
   0xe   : > { %s39_s23 = sadd.s32 1, %s890_s19  ;;  %s48_s24 = sadd.s32 1, %s882_s17 }
   0xf   : > { %p41_p0 = scmp.ge.s32.totalorder %s39_s23, 2  ;;  %p55_p1 = scmp.ne.s32.totalorder %s882_s17, %s878_s16 }
  0x10   : > { %p56_p2 = scmp.eq.s32.totalorder %s894_s20, 0  ;;  %p61_p3 = scmp.ne.s32.totalorder %s878_s16, %s874_s15 }
  0x11   : > { %s1270_s23 = smov (%p41_p0, %s39_s23), 0  ;;  %p62_p5 = scmp.eq.s32.totalorder %s957_s21, 0 }
  0x12   : > { %1243 = sst [smem:[#allocation17_spill]] %s1270_s23  ;;  %p969_p4 = por %p56_p2, %p55_p1 }
  0x13   : > { %s45_s26 = ssub.s32 %s890_s19, %s1270_s23  ;;  %p141_p6 = scmp.eq.s32.totalorder %s957_s21, 1 }
  0x14   : > { %p46_p7 = scmp.eq.s32.totalorder %s45_s26, 0  ;;  %p977_p8 = por %p62_p5, %p61_p3 }
  0x15   : > { %p981_p9 = por %p141_p6, %p55_p1  ;;  %p147_p10 = scmp.eq.s32.totalorder %s577_s22, 1 }
  0x16   : > { %s1245_s27 = scalar_select %p977_p8, 1, 0 }
  0x17   : > { %s1246_s28 = scalar_select %p981_p9, 1, 0 }
  0x18   : > { %s986_s29 = scalar_select %p46_p7, %s882_s17, %s48_s24  }
  0x19   : > { %p988_p11 = por %p147_p10, %p61_p3  ;;  %p635_p13 = scmp.lt.s32.totalorder %s894_s20, 2 }
  0x1a   : > { %1247 = sst [smem:[#allocation18_spill]] %s986_s29  ;;  %s1232_s5 = sand.u32 1, %s882_s17  }
  0x1b   : > { %s1248_s30 = scalar_select %p988_p11, 1, 0 }
  0x1c   : > { %s997_s6 = sshll.u32 %s1232_s5, 5  ;;  %s1000_s7 = sshll.u32 %s890_s19, 9 }
  0x1d   : > { %p1004_p0 = pnand %p635_p13, %p969_p4  ;;  %s213_s9 = sand.u32 1, %s894_s20  }
  0x1e   : > { %s1250_s1 = sld [smem:[#allocation19_spill]]  ;;  %s217_s13 = scalar_lea.vmem [#allocation5], %s997_s6 }
  0x1f   : > { %s1249_s8 = scalar_select %p1004_p0, 1, 0 }
  0x20   : > { %s226_s14 = sshll.u32 %s217_s13, 4  ;;  %s1020_s22 = scalar_lea.sflag [#allocation6], %s213_s9  ;;  %s1017_s14 = int_to_ptr.vmem [resolvable:$true] %s226_s14 }
  0x21   : > { %p1026_p4 = pneg %p1004_p0 }
  0x24   : > { %s1013_s12 = scalar_lea.hbm %s1250_s1, %s1000_s7  ;;  %s691_s11 = scalar_lea.hbm %s1250_s1, 1024 }
  0x25   : > { %s686_s24 = scalar_lea.hbm %s1013_s12, 512  ;;  %p692_p7 = scmp.lt.u32.totalorder %s1013_s12, %s1250_s1 }
  0x26   : > { %p687_p3 = scmp.ne.s32.totalorder %s1013_s12, %s686_s24  ;;  %p693_p10 = scmp.lt.u32.totalorder %s691_s11, %s686_s24 }
  0x27   : > { %p695_p12 = scmp.lt.u32.totalorder %s686_s24, %s1013_s12 }
  0x28   : > { %p689_p5 = pnand %p1026_p4, %p687_p3  ;;  %p694_p13 = por %p693_p10, %p692_p7 }
  0x2a   : > { %p690_p6 = pneg %p689_p5  ;;  %p696_p1 = por %p695_p12, %p694_p13 }
  0x2c   : > { %p697_p2 = pnand %p696_p1, %p690_p6 }
  0x2e   : > { %700 = shalt.err (!%p697_p2)
}
  0x2f   : > { %s701_s9 = scalar_lea.vmem %s1017_s14, 512  ;;  %s896_s26 = smov [#allocation5]  }
  0x30   : > { %p702_p3 = scmp.ne.s32.totalorder %s1017_s14, %s701_s9  ;;  %s706_s10 = sshll.u32 %s896_s26, 4  ;;  %s707_s10 = int_to_ptr.vmem [resolvable:$false] %s706_s10 }
  0x31   : > { %s708_s5 = scalar_lea.vmem %s707_s10, 1024  ;;  %p709_p9 = scmp.lt.s32.totalorder %s1017_s14, %s707_s10 }
  0x32   : > { %p704_p5 = pnand %p702_p3, %p1026_p4  ;;  %p710_p8 = scmp.lt.s32.totalorder %s708_s5, %s701_s9 }
  0x34   : > { %p705_p11 = pneg %p704_p5  ;;  %p711_p7 = por %p710_p8, %p709_p9 }
  0x36   : > { %p712_p10 = pnand %p711_p7, %p705_p11 }
  0x38   : > { %715 = shalt.err (!%p712_p10)
}
  0x39   : > { %624 = dma.hbm_to_vmem [thread:$0]  (!%p1004_p0), %s1013_s12, 512, %s1017_s14, %s1020_s22  }
  0x3a   : > { %p1252_p12 = scmp.lt.s32.totalorder %s894_s20, 3  ;;  %p1253_p1 = scmp.ge.s32.totalorder %s894_s20, 1 }
  0x3b   : > { %s1062_s9 = scalar_lea.hbm %s1227_s0, %s1000_s7  ;;  %s197_s26 = scalar_lea.vmem [#allocation2], %s997_s6 }
  0x3c   : > { %p1054_p2 = pnand %p1253_p1, %p1252_p12  ;;  %s206_s10 = sshll.u32 %s197_s26, 4  ;;  %s1065_s10 = int_to_ptr.vmem [resolvable:$true] %s206_s10 }
  0x3d   : > { %s1071_s5 = scalar_lea.hbm %s1229_s2, %s1000_s7  ;;  %s1255_s1 = sand.u32 1, %s882_s17  }
  0x3e   : > { %s1254_s24 = scalar_select %p1054_p2, 1, 0 }
  0x3f   : > { %s194_s23 = scalar_lea.sflag [#allocation3], %s1255_s1  ;;  %s716_s19 = scalar_lea.hbm %s1062_s9, 512 }
  0x40   : > { %p717_p8 = scmp.ne.s32.totalorder %s1062_s9, %s716_s19  ;;  %s721_s29 = scalar_lea.hbm %s1227_s0, 1024 }
  0x41   : > { %p722_p6 = scmp.lt.u32.totalorder %s1062_s9, %s1227_s0  ;;  %p723_p13 = scmp.lt.u32.totalorder %s721_s29, %s716_s19 }
  0x42   : > { %p719_p9 = pnand %p717_p8, %p1026_p4  ;;  %p725_p5 = scmp.lt.u32.totalorder %s716_s19, %s1062_s9 }
  0x43   : > { %p724_p3 = por %p723_p13, %p722_p6 }
  0x44   : > { %p720_p11 = pneg %p719_p9 }
  0x45   : > { %p726_p7 = por %p725_p5, %p724_p3 }
  0x47   : > { %p727_p10 = pnand %p726_p7, %p720_p11 }
  0x49   : > { %730 = shalt.err (!%p727_p10)
}
  0x4a   : > { %s731_s1 = scalar_lea.vmem %s1065_s10, 512  ;;  %s897_s7 = smov [#allocation2]  }
  0x4b   : > { %p732_p12 = scmp.ne.s32.totalorder %s1065_s10, %s731_s1  ;;  %s736_s12 = sshll.u32 %s897_s7, 4  ;;  %s737_s12 = int_to_ptr.vmem [resolvable:$false] %s736_s12 }
  0x4c   : > { %s738_s20 = scalar_lea.vmem %s737_s12, 1024  ;;  %p739_p9 = scmp.lt.s32.totalorder %s1065_s10, %s737_s12 }
  0x4d   : > { %p734_p1 = pnand %p732_p12, %p1026_p4  ;;  %p740_p2 = scmp.lt.s32.totalorder %s738_s20, %s731_s1 }
  0x4f   : > { %p735_p8 = pneg %p734_p1  ;;  %p741_p6 = por %p740_p2, %p739_p9 }
  0x51   : > { %p742_p13 = pnand %p741_p6, %p735_p8 }
  0x53   : > { %745 = shalt.err (!%p742_p13)
}
  0x54   : > { %621 = dma.hbm_to_vmem [thread:$0]  (!%p1004_p0), %s1062_s9, 512, %s1065_s10, %s194_s23  }
  0x55   : > { %s237_s19 = scalar_lea.vmem [#allocation7], %s997_s6  ;;  %s746_s14 = scalar_lea.hbm %s1071_s5, 512 }
  0x56   : > { %s246_s29 = sshll.u32 %s237_s19, 4  ;;  %p747_p11 = scmp.ne.s32.totalorder %s1071_s5, %s746_s14  ;;  %s247_s29 = int_to_ptr.vmem [resolvable:$true] %s246_s29 }
  0x57   : > { %s751_s26 = scalar_lea.hbm %s1229_s2, 1024  ;;  %p752_p5 = scmp.lt.u32.totalorder %s1071_s5, %s1229_s2 }
  0x58   : > { %p749_p2 = pnand %p747_p11, %p1026_p4  ;;  %p753_p7 = scmp.lt.u32.totalorder %s751_s26, %s746_s14 }
  0x59   : > { %p755_p12 = scmp.lt.u32.totalorder %s746_s14, %s1071_s5 }
  0x5a   : > { %p750_p3 = pneg %p749_p2  ;;  %p754_p10 = por %p753_p7, %p752_p5 }
  0x5c   : > { %p756_p1 = por %p755_p12, %p754_p10 }
  0x5e   : > { %p757_p8 = pnand %p756_p1, %p750_p3 }
  0x60   : > { %760 = shalt.err (!%p757_p8)
}
  0x61   : > { %s761_s23 = scalar_lea.vmem %s247_s29, 512  ;;  %s898_s6 = smov [#allocation7]  }
  0x62   : > { %p762_p9 = scmp.ne.s32.totalorder %s247_s29, %s761_s23  ;;  %s766_s9 = sshll.u32 %s898_s6, 4  ;;  %s767_s9 = int_to_ptr.vmem [resolvable:$false] %s766_s9 }
  0x63   : > { %s768_s10 = scalar_lea.vmem %s767_s9, 1024  ;;  %p769_p11 = scmp.lt.s32.totalorder %s247_s29, %s767_s9 }
  0x64   : > { %p764_p6 = pnand %p762_p9, %p1026_p4  ;;  %p770_p2 = scmp.lt.s32.totalorder %s768_s10, %s761_s23 }
  0x66   : > { %p765_p13 = pneg %p764_p6  ;;  %p771_p0 = por %p770_p2, %p769_p11 }
  0x68   : > { %p772_p5 = pnand %p771_p0, %p765_p13 }
  0x6a   : > { %775 = shalt.err (!%p772_p5)
}
  0x6b   : > { %p1256_p7 = scmp.ne.s32.totalorder %s1249_s8, 0  ;;  %p1257_p3 = scmp.ne.s32.totalorder %s1254_s24, 0 }
  0x6c   : > { %s1118_s25 = sand.u32 (!%p1257_p3), 1, %s878_s16   ;;  %p1258_p4 = scmp.ne.s32.totalorder (!%p1257_p3), %s1245_s27, 0 }
  0x6d   : > { %627 = dma.hbm_to_vmem [thread:$0]  (!%p1256_p7), %s1071_s5, 512, %s247_s29, %s1020_s22  }
  0x6e   : > { %255 = sbr.rel (%p1257_p3) target bundleno = 379 (0x17b), region = 32  ;;  %s590_s12 = sshll.u32 (!%p1257_p3), %s1118_s25, 5 }
  0x6f   : > { %s258_s20 = scalar_lea.sflag (!%p1257_p3), [#allocation3], %s1118_s25  ;;  %s261_s19 = scalar_lea.vmem (!%p1257_p3), [#allocation2], %s590_s12 }
  0x75   : > { %857 = dma.done.wait (%p1258_p4), %s258_s20, 512  }
  0x76   : > { %859 = vsyncadd (%p1258_p4), %s258_s20, 4294966784  ;;  %s266_s8 = sand.u32 1, %s957_s21   ;;  %s270_s24 = scalar_lea.vmem [#allocation5], %s590_s12 }
  0x77   : > { %s267_s22 = scalar_lea.sflag [#allocation6], %s266_s8 }
  0x78   : > { %861 = dma.done.wait (%p1258_p4), %s267_s22, 1024  }
  0x79   : > { %863 = vsyncadd (%p1258_p4), %s267_s22, 4294966272  ;;  %v328_v0 = vld [vmem:[%s261_s19] sm:$0xff]  ;;  %v329_v1 = vld [vmem:[%s261_s19 + $0x8] sm:$0xff]  ;;  %s279_s5 = scalar_lea.vmem [#allocation7], %s590_s12  ;;  %s593_s21 = sshll.u32 %s1118_s25, 3 }
  0x7a   : > { %v330_v2 = vld [vmem:[%s261_s19 + $0x10] sm:$0xff]  ;;  %v331_v3 = vld [vmem:[%s261_s19 + $0x18] sm:$0xff]  ;;  %v332_v4 = vld [vmem:[%s270_s24] sm:$0xff]  ;;  %s597_s27 = sshll.u32 %s886_s18, 7  ;;  %s311_s29 = scalar_lea.vmem [#allocation8], %s593_s21 }
  0x7b   : > { %v333_v5 = vld [vmem:[%s270_s24 + $0x8] sm:$0xff]  ;;  %v334_v6 = vld [vmem:[%s270_s24 + $0x10] sm:$0xff]  ;;  %v335_v7 = vld [vmem:[%s270_s24 + $0x18] sm:$0xff]  ;;  %v340_v8 = vsub.f32 %v328_v0, %v332_v4  ;;  %s407_s14 = sshll.u32 %s311_s29, 4  ;;  %s1138_s1 = scalar_lea.hbm %s1230_s3, %s597_s27  ;;  %s1140_s14 = int_to_ptr.vmem [resolvable:$true] %s407_s14 }
  0x7c   : > { %v341_v9 = vsub.f32 %v329_v1, %v333_v5  ;;  %v336_v10 = vld [vmem:[%s279_s5] sm:$0xff]  ;;  %v342_v11 = vsub.f32 %v330_v2, %v334_v6  ;;  %v343_v12 = vsub.f32 %v331_v3, %v335_v7  ;;  %v337_v13 = vld [vmem:[%s279_s5 + $0x8] sm:$0xff]  ;;  %v338_v14 = vld [vmem:[%s279_s5 + $0x10] sm:$0xff]  ;;  %s1142_s7 = scalar_lea.vmem [#allocation9], %s593_s21  ;;  %s389_s9 = scalar_lea.sflag [#allocation4], %s1118_s25 }
  0x7d   : > { %v339_v15 = vld [vmem:[%s279_s5 + $0x18] sm:$0xff]  ;;  %v348_v16 = vand.u32 2147483647, %v340_v8  ;;  %v344_v18 = vmul.f32 %v340_v8, %v336_v10  ;;  %s420_s23 = sshll.u32 %s1142_s7, 4  ;;  %s776_s10 = scalar_lea.vmem %s1140_s14, 128  ;;  %s1179_s23 = int_to_ptr.vmem [resolvable:$true] %s420_s23 }
  0x7e   : > { %v349_v17 = vand.u32 2147483647, %v341_v9  ;;  %v345_v19 = vmul.f32 %v341_v9, %v337_v13  ;;  %v350_v20 = vand.u32 2147483647, %v342_v11  ;;  %v346_v21 = vmul.f32 %v342_v11, %v338_v14  ;;  %p777_p0 = scmp.ne.s32.totalorder %s1140_s14, %s776_s10  ;;  %p1259_p10 = scmp.ne.s32.totalorder %s1246_s28, 0 }
  0x7f   : > { %v347_v22 = vmul.f32 %v343_v12, %v339_v15  ;;  %v351_v23 = vand.u32 2147483647, %v343_v12  ;;  %v352_v25 = vand.u32 2147483647, %v344_v18  ;;  %s899_s12 = smov [#allocation8]  }
  0x80   : > { %v357_v24 = vadd.f32 %v349_v17, %v348_v16  ;;  %v353_v26 = vand.u32 2147483647, %v345_v19  ;;  %v354_v27 = vand.u32 2147483647, %v346_v21  ;;  %p778_p12 = pnand %p777_p0, %p1259_p10  ;;  %s780_s20 = sshll.u32 %s899_s12, 4  ;;  %s781_s20 = int_to_ptr.vmem [resolvable:$false] %s780_s20 }
  0x81   : > { %v355_v29 = vand.u32 2147483647, %v347_v22  ;;  %s782_s19 = scalar_lea.vmem %s781_s20, 256  ;;  %p783_p8 = scmp.lt.s32.totalorder %s1140_s14, %s781_s20 }
  0x82   : > { %v358_v28 = vadd.f32 %v357_v24, %v350_v20  ;;  %v373_v30 = vadd.f32 %v353_v26, %v352_v25  ;;  %p779_p1 = pneg %p778_p12  ;;  %p784_p9 = scmp.lt.s32.totalorder %s782_s19, %s776_s10 }
  0x84   : > { %v359_v31 = vadd.f32 %v358_v28, %v351_v23  ;;  %v374_v32 = vadd.f32 %v373_v30, %v354_v27  ;;  %p785_p6 = por %p784_p9, %p783_p8 }
  0x86   : > { %360 = vadd.xlane.f32.xlu0 %v359_v31  ;;  %v375_v33 = vadd.f32 %v374_v32, %v355_v29  ;;  %p786_p13 = pnand %p785_p6, %p779_p1 }
  0x8a   : > { %376 = vadd.xlane.f32.xlu0 %v375_v33 }
 0x113   : > { %v361_v34 = vpop.xlane.xlu0 %360 }
 0x114   : > { %v362_v35 = vrot.slane %v361_v34, 4 }
 0x116   : > { %v363_v36 = vadd.f32 %v362_v35, %v361_v34 }
 0x117   : > { %v377_v37 = vpop.xlane.xlu0 %376 }
 0x118   : > { %v364_v38 = vrot.slane %v363_v36, 2  ;;  %v378_v39 = vrot.slane %v377_v37, 4 }
 0x11a   : > { %v379_v40 = vadd.f32 %v378_v39, %v377_v37  ;;  %v365_v41 = vadd.f32 %v364_v38, %v363_v36 }
 0x11c   : > { %v380_v42 = vrot.slane %v379_v40, 2  ;;  %v366_v43 = vrot.slane %v365_v41, 1 }
 0x11e   : > { %v381_v44 = vadd.f32 %v380_v42, %v379_v40  ;;  %v367_v45 = vadd.f32 %v366_v43, %v365_v41 }
 0x120   : > { %604 = vpush %v367_v45  ;;  %v382_v46 = vrot.slane %v381_v44, 1 }
 0x122   : > { %v383_v47 = vadd.f32 %v382_v46, %v381_v44 }
 0x124   : > { %606 = vpush %v383_v47 }
 0x151   : > { %s605_s11 = spop %604 }
 0x152   : > { %v369_v48 = vstv %s605_s11 }
 0x153   : > { %371 = vst [vmem:[%s311_s29] sm:$0xff] %v369_v48 }
 0x155   : > { %s1145_s6 = spop %606 }
 0x156   : > { %v385_v49 = vstv %s1145_s6 }
 0x157   : > { %789 = shalt.err (!%p786_p13)
}
 0x158   : > { %s790_s8 = scalar_lea.hbm %s1138_s1, 128  ;;  %s794_s5 = scalar_lea.hbm %s1230_s3, 256 }
 0x159   : > { %p791_p11 = scmp.ne.s32.totalorder %s1138_s1, %s790_s8  ;;  %p795_p7 = scmp.lt.u32.totalorder %s1138_s1, %s1230_s3 }
 0x15a   : > { %p796_p3 = scmp.lt.u32.totalorder %s794_s5, %s790_s8  ;;  %p798_p0 = scmp.lt.u32.totalorder %s790_s8, %s1138_s1 }
 0x15b   : > { %p792_p2 = pnand %p791_p11, %p1259_p10 }
 0x15c   : > { %p797_p4 = por %p796_p3, %p795_p7 }
 0x15d   : > { %p793_p5 = pneg %p792_p2 }
 0x15e   : > { %p799_p12 = por %p798_p0, %p797_p4 }
 0x160   : > { %p800_p1 = pnand %p799_p12, %p793_p5 }
 0x162   : > { %803 = shalt.err (!%p800_p1)
}
 0x163   : > { %614 = dma.vmem_to_hbm [thread:$0]  (%p1259_p10), %s1140_s14, 128, %s1138_s1, %s389_s9   ;;  %387 = vst [vmem:[%s1142_s7] sm:$0xff] %v385_v49 }
 0x164   : > { %s1175_s26 = scalar_lea.hbm %s1231_s4, %s597_s27  ;;  %s394_s6 = scalar_lea.sflag [#allocation10], %s1118_s25 }
 0x165   : > { %s804_s10 = scalar_lea.vmem %s1179_s23, 128  ;;  %s900_s14 = smov [#allocation9]  }
 0x166   : > { %p805_p8 = scmp.ne.s32.totalorder %s1179_s23, %s804_s10  ;;  %s808_s18 = sshll.u32 %s900_s14, 4  ;;  %s809_s18 = int_to_ptr.vmem [resolvable:$false] %s808_s18 }
 0x167   : > { %s810_s1 = scalar_lea.vmem %s809_s18, 256  ;;  %p811_p13 = scmp.lt.s32.totalorder %s1179_s23, %s809_s18 }
 0x168   : > { %p806_p9 = pnand %p805_p8, %p1259_p10  ;;  %p812_p11 = scmp.lt.s32.totalorder %s810_s1, %s804_s10 }
 0x16a   : > { %p807_p6 = pneg %p806_p9  ;;  %p813_p2 = por %p812_p11, %p811_p13 }
 0x16c   : > { %p814_p5 = pnand %p813_p2, %p807_p6 }
 0x16e   : > { %817 = shalt.err (!%p814_p5)
}
 0x16f   : > { %s818_s25 = scalar_lea.hbm %s1175_s26, 128  ;;  %s822_s9 = scalar_lea.hbm %s1231_s4, 256 }
 0x170   : > { %p819_p7 = scmp.ne.s32.totalorder %s1175_s26, %s818_s25  ;;  %p823_p0 = scmp.lt.u32.totalorder %s1175_s26, %s1231_s4 }
 0x171   : > { %p824_p12 = scmp.lt.u32.totalorder %s822_s9, %s818_s25  ;;  %p826_p8 = scmp.lt.u32.totalorder %s818_s25, %s1175_s26 }
 0x172   : > { %p820_p3 = pnand %p819_p7, %p1259_p10 }
 0x173   : > { %p825_p1 = por %p824_p12, %p823_p0 }
 0x174   : > { %p821_p4 = pneg %p820_p3 }
 0x175   : > { %p827_p9 = por %p826_p8, %p825_p1 }
 0x177   : > { %p828_p6 = pnand %p827_p9, %p821_p4 }
 0x179   : > { %831 = shalt.err (!%p828_p6)
}
 0x17a   : > { %615 = dma.vmem_to_hbm [thread:$0]  (%p1259_p10), %s1179_s23, 128, %s1175_s26, %s394_s6  }
 0x17b PF: > { %s1260_s19 = sld [smem:[#allocation16_spill]]  ;;  %s432_s8 = sand.u32 1, %s874_s15  }
 0x17c   : > { %p1261_p13 = scmp.ne.s32.totalorder %s1248_s30, 0  ;;  %s433_s22 = scalar_lea.sflag [#allocation4], %s432_s8 }
 0x181   : > { %p1262_p11 = scmp.ge.s32.totalorder %s1260_s19, 2 }
 0x183   : > { %p629_p2 = pnand %p1262_p11, %p1261_p13 }
 0x185   : > { %865 = dma.done.wait (!%p629_p2), %s433_s22, 128  }
 0x186   : > { %867 = vsyncadd (!%p629_p2), %s433_s22, 4294967168  ;;  %s442_s24 = scalar_lea.sflag [#allocation10], %s432_s8 }
 0x187   : > { %869 = dma.done.wait (!%p629_p2), %s442_s24, 128  }
 0x188   : > { %871 = vsyncadd (!%p629_p2), %s442_s24, 4294967168  ;;  %s27_s20 = sadd.s32 1, %s1260_s19   ;;  %s1263_s28 = sld [smem:[#allocation18_spill]] }
 0x189   : > { %p24_p5 = scmp.ge.s32.totalorder %s27_s20, 4   ;;  %s1264_s18 = sld [smem:[#allocation15_spill]] }
 0x18a   : > { %s1265_s19 = sld [smem:[#allocation17_spill]]  ;;  %s1266_s15 = smov %s878_s16 }
 0x18b   : > { %s1267_s16 = smov %s882_s17  ;;  %26 = sbr.rel (!%p24_p5) target bundleno = 12 (0xc), region = 122 }
 0x18e   : > { %s1268_s17 = smov %s1263_s28 }
 0x192   :  { %447 = vsyncpa [#allocation3], 1 }
 0x193   :  { %449 = vsyncpa [#allocation3 + $0x1], 1 }
 0x194   :  { %450 = vsyncpa [#allocation6], 1 }
 0x195   :  { %452 = vsyncpa [#allocation6 + $0x1], 1 }
 0x196   :  { %453 = vsyncpa [#allocation4], 1 }
 0x197   :  { %455 = vsyncpa [#allocation4 + $0x1], 1 }
 0x198   :  { %456 = vsyncpa [#allocation10], 1 }
 0x199   :  { %458 = vsyncpa [#allocation10 + $0x1], 1 }

</bundles_post_ra>
